<compile_context>
chip_gen: v5e
topology: v5e:2x2
jax: 0.10.0
libtpu: 0.0.40
codegen_flags: <defaults>
</compile_context>

<pallas_src>
import jax
import jax.numpy as jnp
from jax.experimental import pallas as pl
from jax.experimental.pallas import tpu as pltpu


def _fused_heads_kernel(x_ref, w_ref, b_ref, o_ref):
    # x: [TM, H], w: [H, NP], b: [1, NP] (f32)  ->  o: [TM, NP]
    acc = jnp.dot(x_ref[...], w_ref[...], preferred_element_type=jnp.float32)
    o_ref[...] = (acc + b_ref[...]).astype(o_ref.dtype)


def _pick_tm(M, tm_max=2048):
    """Row-tile size: multiple of 8 (or == M), <= tm_max, ideally dividing M.

    Prefers >= 2 grid steps so dimension_semantics=("parallel",) can shard the
    row loop across v7x's two TensorCores, and prefers a TM that divides M so
    the last tile is a full (unmasked) store.
    """
    if M <= tm_max:
        if M >= 16 and M % 16 == 0:
            return M // 2        # two full tiles -> both v7x TCs busy
        return M                 # single full-extent tile (always legal)
    cap = tm_max - tm_max % 8
    for tm in range(cap, 7, -8):
        if M % tm == 0:
            return tm
    return cap                   # fall back: masked tail tile (still correct)


def fused_heads_matmul(x2d, w_cat, b_cat, *, out_dtype=None, tm_max=2048):
    """out = x2d @ w_cat + b_cat, tiled over rows, weights VMEM-resident.

    x2d:   [M, H]   activations (all tokens, flattened), f32 or bf16
    w_cat: [H, NP]  both heads' weights, zero-padded to lane-dense NP
    b_cat: [1, NP]  both heads' biases (f32), zero-padded
    """
    M, H = x2d.shape
    H2, NP = w_cat.shape
    assert H == H2, (H, H2)
    assert NP % 128 == 0, NP
    if out_dtype is None:
        out_dtype = x2d.dtype

    TM = _pick_tm(M, tm_max)
    grid = (pl.cdiv(M, TM),)

    cost = pl.CostEstimate(
        flops=2 * M * H * NP,
        transcendentals=0,
        bytes_accessed=(x2d.size * x2d.dtype.itemsize
                        + w_cat.size * w_cat.dtype.itemsize
                        + b_cat.size * b_cat.dtype.itemsize
                        + M * NP * jnp.dtype(out_dtype).itemsize),
    )

    return pl.pallas_call(
        _fused_heads_kernel,
        out_shape=jax.ShapeDtypeStruct((M, NP), out_dtype),
        grid=grid,
        in_specs=[
            pl.BlockSpec((TM, H), lambda i: (i, 0)),   # stream activation rows
            pl.BlockSpec((H, NP), lambda i: (0, 0)),   # weights VMEM-resident
            pl.BlockSpec((1, NP), lambda i: (0, 0)),   # bias VMEM-resident
        ],
        out_specs=pl.BlockSpec((TM, NP), lambda i: (i, 0)),
        compiler_params=pltpu.CompilerParams(
            dimension_semantics=("parallel",),         # shard rows over v7x TCs
            vmem_limit_bytes=32 * 1024 * 1024,         # cover v5e's 16 MiB default
        ),
        cost_estimate=cost,
    )(x2d, w_cat, b_cat)


def prepare_packed_params(params, *, compute_dtype=jnp.bfloat16):
    """Pack both heads into one lane-dense weight/bias. Call ONCE at load time.

    Column layout: [0:NT] = tag head (lane offset 0 so the big [B, S-1, NT]
    slice is lane-aligned), [NT:NT+NI] = intent head, rest zero padding.
    """
    w_i, b_i = params["intent_w"], params["intent_b"]   # [H, NI], [NI]
    w_t, b_t = params["tag_w"], params["tag_b"]          # [H, NT], [NT]
    H, NI = w_i.shape
    NT = w_t.shape[1]
    NP = max(128, ((NI + NT + 127) // 128) * 128)        # no extra padding beyond 128k

    w_cat = jnp.zeros((H, NP), dtype=compute_dtype)
    w_cat = w_cat.at[:, :NT].set(w_t.astype(compute_dtype))
    w_cat = w_cat.at[:, NT:NT + NI].set(w_i.astype(compute_dtype))
    # Bias stays f32: added to the f32 MXU accumulator inside the kernel.
    b_cat = jnp.zeros((1, NP), dtype=jnp.float32)
    b_cat = b_cat.at[0, :NT].set(b_t.astype(jnp.float32))
    b_cat = b_cat.at[0, NT:NT + NI].set(b_i.astype(jnp.float32))
    return {"w_cat": w_cat, "b_cat": b_cat, "num_intent": NI, "num_tag": NT}


def model_single_linear_forward(last_hidden_state, w_cat, b_cat, *,
                                num_intent, num_tag, out_dtype=None):
    """Reproduces ModelSingleLinear.forward given the BERT last_hidden_state.

    last_hidden_state: [B, S, H]
    returns: (intent [B, num_intent], tag [B, S-1, num_tag])
    """
    B, S, H = last_hidden_state.shape
    NP = w_cat.shape[1]
    assert num_intent + num_tag <= NP

    # Contiguous view — no HBM copy (unlike slicing [:, 1:, :] pre-kernel).
    x2d = last_hidden_state.reshape(B * S, H)
    if x2d.dtype != w_cat.dtype:
        # TODO(synk): in the full model the backbone should emit the compute
        # dtype directly; a standalone astype here costs an extra HBM pass.
        x2d = x2d.astype(w_cat.dtype)
    if out_dtype is None:
        out_dtype = x2d.dtype

    out = fused_heads_matmul(x2d, w_cat, b_cat, out_dtype=out_dtype)  # [B*S, NP]
    out3 = out.reshape(B, S, NP)

    # Tag head at lane offset 0 -> lane-aligned slice over the big tensor.
    tag = out3[:, 1:, :num_tag]
    # Intent head only needs the CLS row (computed for all rows, discarded here).
    intent = out3[:, 0, num_tag:num_tag + num_intent]
    return intent, tag


def init_params(key, hidden_size, num_intent_classes, num_tag_classes):
    k1, k2, k3, k4 = jax.random.split(key, 4)
    bound = 1.0 / jnp.sqrt(hidden_size)
    return {
        "intent_w": jax.random.uniform(
            k1, (hidden_size, num_intent_classes), jnp.float32, -bound, bound),
        "intent_b": jax.random.uniform(
            k2, (num_intent_classes,), jnp.float32, -bound, bound),
        "tag_w": jax.random.uniform(
            k3, (hidden_size, num_tag_classes), jnp.float32, -bound, bound),
        "tag_b": jax.random.uniform(
            k4, (num_tag_classes,), jnp.float32, -bound, bound),
    }


if __name__ == "__main__":
    B, S, H = 2, 8, 32            # batch, seq, hidden (toy shapes)
    NUM_INTENT, NUM_TAG = 4, 6

    key = jax.random.PRNGKey(0)
    k_h, k_p = jax.random.split(key)
    last_hidden_state = jax.random.normal(k_h, (B, S, H), jnp.float32)
    params = init_params(k_p, H, NUM_INTENT, NUM_TAG)

    fwd = jax.jit(model_single_linear_forward,
                  static_argnames=("num_intent", "num_tag", "out_dtype"))

    # --- Fast path (default): bf16 activations/weights, bf16 output. --------
    packed_bf16 = prepare_packed_params(params, compute_dtype=jnp.bfloat16)
    # TODO(synk): in the full model the BERT backbone would emit bf16 directly.
    x_bf16 = last_hidden_state.astype(jnp.bfloat16)
    intent, tag = fwd(x_bf16, packed_bf16["w_cat"], packed_bf16["b_cat"],
                      num_intent=NUM_INTENT, num_tag=NUM_TAG)
    jax.block_until_ready((intent, tag))

    # --- f32 path: tight correctness check of the kernel itself. ------------
    packed_f32 = prepare_packed_params(params, compute_dtype=jnp.float32)
    intent_f32, tag_f32 = fwd(last_hidden_state, packed_f32["w_cat"],
                              packed_f32["b_cat"],
                              num_intent=NUM_INTENT, num_tag=NUM_TAG)
    jax.block_until_ready((intent_f32, tag_f32))

    # Plain-JAX references.
    ref_intent = last_hidden_state[:, 0, :] @ params["intent_w"] + params["intent_b"]
    ref_tag = last_hidden_state[:, 1:, :] @ params["tag_w"] + params["tag_b"]

    assert intent.shape == (B, NUM_INTENT), intent.shape
    assert tag.shape == (B, S - 1, NUM_TAG), tag.shape
    assert intent.dtype == jnp.bfloat16 and tag.dtype == jnp.bfloat16

    # f32 path: exact (modulo accumulation order).
    assert jnp.allclose(intent_f32, ref_intent, atol=1e-5)
    assert jnp.allclose(tag_f32, ref_tag, atol=1e-5)
    # bf16 path: bf16 inputs/weights/output store -> loose tolerance.
    assert jnp.allclose(intent.astype(jnp.float32), ref_intent, atol=5e-2, rtol=5e-2)
    assert jnp.allclose(tag.astype(jnp.float32), ref_tag, atol=5e-2, rtol=5e-2)

    print("KERNEL_OK")
</pallas_src>

<mosaic_0001>
module attributes {stable_mosaic.version = 11 : i64} {
  func.func @_fused_heads_kernel(%arg0: i32, %arg1: memref<8x32xbf16, #tpu.memory_space<vmem>>, %arg2: memref<32x128xbf16, #tpu.memory_space<vmem>>, %arg3: memref<1x128xf32, #tpu.memory_space<vmem>>, %arg4: memref<8x128xbf16, #tpu.memory_space<vmem>>) attributes {dimension_semantics = [#tpu.dimension_semantics<parallel>], iteration_bounds = array<i64: 2>, scalar_prefetch = 0 : i64, scratch_operands = 0 : i64, tpu.core_type = #tpu.core_type<tc>, window_params = [{transform_indices = @transform_0, window_bounds = array<i64: 8, 32>}, {pipeline_mode = #tpu.pipeline_mode<synchronous>, transform_indices = @transform_1, window_bounds = array<i64: 32, 128>}, {pipeline_mode = #tpu.pipeline_mode<synchronous>, transform_indices = @transform_2, window_bounds = array<i64: 1, 128>}, {transform_indices = @transform_3, window_bounds = array<i64: 8, 128>}]} {
    %c0 = arith.constant 0 : index
    %c0_0 = arith.constant 0 : index
    %0 = vector.load %arg1[%c0, %c0_0] : memref<8x32xbf16, #tpu.memory_space<vmem>>, vector<8x32xbf16>
    %c0_1 = arith.constant 0 : index
    %c0_2 = arith.constant 0 : index
    %1 = vector.load %arg2[%c0_1, %c0_2] : memref<32x128xbf16, #tpu.memory_space<vmem>>, vector<32x128xbf16>
    %cst = arith.constant dense<0.000000e+00> : vector<8x128xf32>
    %2 = tpu.matmul %0, %1, %cst {dimension_numbers = #tpu.dot_dimension_numbers<[1], [0], [0], [1], [0, 0, 1, 1], [], []>} : vector<8x32xbf16>, vector<32x128xbf16>, vector<8x128xf32> -> vector<8x128xf32>
    %c0_3 = arith.constant 0 : index
    %c0_4 = arith.constant 0 : index
    %3 = vector.load %arg3[%c0_3, %c0_4] : memref<1x128xf32, #tpu.memory_space<vmem>>, vector<1x128xf32>
    %4 = vector.broadcast %3 : vector<1x128xf32> to vector<8x128xf32>
    %5 = arith.addf %2, %4 : vector<8x128xf32>
    %6 = arith.truncf %5 : vector<8x128xf32> to vector<8x128xbf16>
    %c0_5 = arith.constant 0 : index
    %c0_6 = arith.constant 0 : index
    %7 = vector.load %arg4[%c0_5, %c0_6] : memref<8x128xbf16, #tpu.memory_space<vmem>>, vector<8x128xbf16>
    tpu.vector_store %arg4[%c0_5, %c0_6], %6 {strides = array<i32>} : memref<8x128xbf16, #tpu.memory_space<vmem>>, vector<8x128xbf16>,
    return
  }
  func.func @transform_0(%arg0: i32) -> (i32, i32) {
    %c0_i32 = arith.constant 0 : i32
    %c0_i32_0 = arith.constant 0 : i32
    return %arg0, %c0_i32 : i32, i32
  }
  func.func @transform_1(%arg0: i32) -> (i32, i32) {
    %c0_i32 = arith.constant 0 : i32
    %c0_i32_0 = arith.constant 0 : i32
    %c0_i32_1 = arith.constant 0 : i32
    return %c0_i32, %c0_i32_0 : i32, i32
  }
  func.func @transform_2(%arg0: i32) -> (i32, i32) {
    %c0_i32 = arith.constant 0 : i32
    %c0_i32_0 = arith.constant 0 : i32
    %c0_i32_1 = arith.constant 0 : i32
    return %c0_i32, %c0_i32_0 : i32, i32
  }
  func.func @transform_3(%arg0: i32) -> (i32, i32) {
    %c0_i32 = arith.constant 0 : i32
    %c0_i32_0 = arith.constant 0 : i32
    return %arg0, %c0_i32 : i32, i32
  }
}

</mosaic_0001>

<bundles_post_ra>
// kernel: model_single_linear_forward.1
= control target key start
LH: loop header
LB: loop body
LE: loop exit
PB: predicated region body
PF: predicated region fallthrough
CT: control target
= control target key end

     0   :  { %8 = vsyncpa [#allocation3], 0  ;;  %s626_s0 = inlined_call_operand.hbm [shape: bf16[16,32], index: 0, kind: input, shape index: {}]   ;;  %s627_s1 = inlined_call_operand.hbm [shape: bf16[32,128], index: 1, kind: input, shape index: {}]   ;;  %s628_s2 = inlined_call_operand.vmem [shape: f32[1,128], index: 2, kind: input, shape index: {}]   ;;  %s629_s3 = inlined_call_operand.vmem [shape: bf16[16,128], index: 3, kind: output, shape index: {}]  }
   0x1   :  { %10 = vsyncpa [#allocation3 + $0x1], 0 }
   0x2   :  { %11 = vsyncpa [#allocation5], 0  ;;  %s520_s12 = smov 0   ;;  %s522_s13 = smov 0  }
   0x3   :  { %s524_s14 = smov 0   ;;  %s526_s15 = smov 0  }
   0x4 LB: > { %s127_s18 = sshll.u32 %s627_s1, 4  ;;  %s542_s19 = sadd.s32 4294967295, %s495_s15   ;;  %s495_s15 = sphi %s526_s15, %s636_s15   ;;  %s491_s14 = sphi %s524_s14, %s635_s14   ;;  %s487_s13 = sphi %s522_s13, %s634_s13   ;;  %s483_s12 = sphi %s520_s12, %s633_s12   ;;  %s128_s18 = int_to_ptr.hbm [resolvable:$true] %s127_s18 }
   0x5   : > { %p322_p0 = scmp.ge.s32.totalorder %s495_s15, 1  ;;  %p38_p1 = scmp.eq.s32.totalorder %s542_s19, 0 }
   0x6   : > { %p116_p2 = scmp.lt.s32.totalorder %s495_s15, 3  ;;  %s497_s21 = smov [#allocation4]  }
   0x7   : > { %s129_s22 = sshll.u32 %s497_s21, 4  ;;  %s498_s23 = smov 64   ;;  %s130_s22 = int_to_ptr.vmem [resolvable:$true] %s129_s22 }
   0x8   : > { %p547_p3 = pnand %p322_p0, %p116_p2  ;;  %s499_s24 = smov 4  }
   0x9   : > { %s556_s25 = sadd.s32 1, %s495_s15   ;;  %s24_s27 = sadd.s32 1, %s491_s14 }
   0xa   : > { %p350_p4 = pneg %p547_p3  ;;  %s21_s26 = ssub.s32 %s495_s15, %s556_s25 }
   0xb   : > { %p22_p6 = scmp.eq.s32.totalorder %s21_s26, 0  ;;  %p31_p7 = scmp.ne.s32.totalorder %s491_s14, %s487_s13 }
   0xc   : > { %p351_p5 = pnand %p350_p4, %p38_p1  ;;  %p32_p8 = scmp.eq.s32.totalorder %s495_s15, 0 }
   0xd   : > { %p37_p9 = scmp.ne.s32.totalorder %s487_s13, %s483_s12  ;;  %p359_p12 = scmp.lt.s32.totalorder %s495_s15, 2 }
   0xe   : > { %353 = dma.hbm_to_vmem [thread:$0]  (!%p351_p5), %s128_s18, 256, %s130_s22, [#allocation5], %s498_s23, %s498_s23, %s499_s24  }
   0xf   : > { %s566_s28 = scalar_select %p22_p6, %s491_s14, %s24_s27  }
  0x10   : > { %p33_p10 = por %p32_p8, %p31_p7  ;;  %p570_p11 = por %p38_p1, %p37_p9 }
  0x11   : > { %s146_s30 = sand.u32 1, %s491_s14   ;;  %s326_s5 = sshll.u32 %s495_s15, 2 }
  0x12   : > { %s325_s4 = sshll.u32 %s146_s30, 2  ;;  %s154_s8 = scalar_lea.hbm %s626_s0, %s326_s5 }
  0x13   : > { %s150_s9 = scalar_lea.vmem [#allocation2], %s325_s4  ;;  %s156_s11 = sshll.u32 %s154_s8, 4  ;;  %s157_s11 = int_to_ptr.hbm [resolvable:$true] %s156_s11 }
  0x14   : > { %s158_s10 = sshll.u32 %s150_s9, 4  ;;  %p580_p13 = pnand %p359_p12, %p33_p10  ;;  %s159_s10 = int_to_ptr.vmem [resolvable:$true] %s158_s10 }
  0x15   : > { %s147_s16 = scalar_lea.sflag [#allocation3], %s146_s30  ;;  %s427_s17 = sshra.s32 %s157_s11, 4  ;;  %s428_s17 = int_to_ptr.hbm [resolvable:$true] %s427_s17 }
  0x16   : > { %s429_s18 = scalar_lea.hbm %s428_s17, 4  ;;  %p431_p2 = pneg %p580_p13 }
  0x17   : > { %p430_p0 = scmp.ne.s32.totalorder %s428_s17, %s429_s18  ;;  %s434_s22 = scalar_lea.hbm %s626_s0, 8 }
  0x18   : > { %p435_p6 = scmp.lt.s32.totalorder %s428_s17, %s626_s0  ;;  %p436_p7 = scmp.lt.s32.totalorder %s434_s22, %s429_s18 }
  0x19   : > { %p432_p4 = pnand %p431_p2, %p430_p0 }
  0x1a   : > { %p437_p8 = por %p436_p7, %p435_p6 }
  0x1b   : > { %p433_p5 = pneg %p432_p4 }
  0x1d   : > { %p438_p9 = pnand %p437_p8, %p433_p5 }
  0x1f   : > { %441 = shalt.err (!%p438_p9)
}
  0x20   : > { %357 = dma.hbm_to_vmem [thread:$0]  (!%p580_p13), %s157_s11, 64, %s159_s10, %s147_s16  }
  0x21   : > { %167 = sbr.rel (%p547_p3) target bundleno = 183 (0xb7), region = 32  ;;  %s169_s26 = sand.u32 (!%p547_p3), 1, %s487_s13  }
  0x22   : > { %s328_s27 = sshll.u32 (!%p547_p3), %s169_s26, 2  ;;  %s170_s30 = scalar_lea.sflag (!%p547_p3), [#allocation3], %s169_s26 }
  0x23   : > { %s173_s4 = scalar_lea.vmem (!%p547_p3), [#allocation2], %s328_s27 }
  0x26   : > { %474 = dma.done.wait (%p570_p11), %s170_s30, 64  }
  0x27   : > { %476 = vsyncadd (%p570_p11), %s170_s30, 4294967232 }
  0x28   : > { %478 = dma.done.wait (%p38_p1), [#allocation5], 256  }
  0x29   : > { %480 = vsyncadd (%p38_p1), [#allocation5], 4294967040  ;;  %v343_v0 = vld [vmem:[#allocation4 + $0x8] sm:$0xff]  ;;  %v342_v1 = vld [vmem:[#allocation4] sm:$0xff]  ;;  %vm227_vm0 = vcmask 261120   ;;  %p201_p3 = scmp.lt.s32.totalorder %s542_s19, 1 }
  0x2a   : > { %237 = vmatpush.bf16.msra.mxu0 %v343_v0  ;;  %v206_v2 = vld [vmem:[%s173_s4] sm:$0xf] }
  0x2b   : > { %s638_s19 = smov (!%p201_p3, %s542_s19), 1  ;;  %v396_v3 = vld [vmem:[%s628_s2] ss:$0 sm:$0xff] }
  0x2c   : > { %s330_s5 = sshll.u32 %s638_s19, 2 }
  0x2d   : > { %s204_s8 = scalar_lea.vmem %s629_s3, %s330_s5 }
  0x2e   : > { %238 = vmatpush.bf16.msra.mxu0 %v342_v1 }
  0x31   : > { %339 = vmatmul.msk.bf16.vlgmr.msra.gmra.mxu0 %vm227_vm0, %v206_v2 }
  0xae   : > { %v240_v4 = vpop.f32.mrf.mxu0 }
  0xaf   : > { %v241_v5 = vadd.f32 %v396_v3, %v240_v4 }
  0xb1   : > { %v244_v6 = vpack.c.bf16 %v241_v5, %v241_v5 }
  0xb3   : > { %245 = vst [vmem:[%s204_s8] sm:$0xf] %v244_v6 }
  0xb6   : > { %v242_v7 = vpop.f32.mrf.mxu0 }
  0xb7 PF: > { %p14_p1 = scmp.ge.s32.totalorder %s556_s25, 4   ;;  %s633_s12 = smov %s487_s13 }
  0xb8   : > { %s634_s13 = smov %s491_s14  ;;  %s635_s14 = smov %s566_s28 }
  0xb9   : > { %s636_s15 = smov %s556_s25  ;;  %16 = sbr.rel (!%p14_p1) target bundleno = 4 (0x4), region = 76 }
  0xbe   :  { %265 = vsyncpa [#allocation3], 1 }
  0xbf   :  { %267 = vsyncpa [#allocation3 + $0x1], 1 }
  0xc0   :  { %268 = vsyncpa [#allocation5], 1 }

</bundles_post_ra>
